<compile_context>
chip_gen: v5e
topology: v5e:2x2
jax: 0.10.0
libtpu: 0.0.40
codegen_flags: <defaults>
</compile_context>

<pallas_src>
import jax
import jax.numpy as jnp
from jax.experimental import pallas as pl
from jax.experimental.pallas import tpu as pltpu


def _round_up(n, m):
    return ((n + m - 1) // m) * m


def _pick_chunk(tile):
    # Largest sub-chunk (multiple of 128, <= 512 lanes) dividing the tile:
    # bounds h/p/g live values to <= 16 vregs each inside the inner loop.
    for c in (512, 384, 256, 128):
        if tile % c == 0:
            return c
    return tile  # unreachable: tile is always a multiple of 128


def grasp_encoder_kernel(xT_ref, w1_ref, b1_ref, w2_ref, b2_ref, w3_ref, b3_ref,
                         out_ref):
    # xT_ref : (2, TILE_B) f32  -- batch sits on the 128-lane axis.
    # out_ref: (TILE_B, G)      -- batch-major output block (bf16 or f32).
    tile = xT_ref.shape[1]
    chunk = _pick_chunk(tile)
    n_chunks = tile // chunk
    hp = jax.lax.Precision.HIGHEST

    # Hoisted once per grid step (NOT per sub-chunk): weight columns and the
    # lane-broadcast biases.
    w1 = w1_ref[...]                          # (H, 2)
    w1c0, w1c1 = w1[:, 0:1], w1[:, 1:2]       # (H, 1) each
    b1 = b1_ref[...]                          # (H, 1)
    w2, b2 = w2_ref[...], b2_ref[...]         # (P, H), (P, 1)
    w3, b3 = w3_ref[...], b3_ref[...]         # (G, P), (G, 1)

    def body(c, carry):
        s = pl.multiple_of(c * chunk, 128)
        x = xT_ref[:, pl.ds(s, chunk)]                          # (2, chunk)

        # part_encoder layer 1 (K=2): two VPU broadcast FMAs, no MXU.
        h = jnp.maximum(w1c0 * x[0:1, :] + w1c1 * x[1:2, :] + b1, 0.0)

        # part_encoder layer 2 and grasp_propagation: MXU, f32 accumulation.
        p = jnp.maximum(
            jnp.dot(w2, h, precision=hp,
                    preferred_element_type=jnp.float32) + b2, 0.0)
        g = jnp.maximum(
            jnp.dot(w3, p, precision=hp,
                    preferred_element_type=jnp.float32) + b3, 0.0)  # (G, chunk)

        # Transpose on the XLU (idle slot) and store batch-major; the
        # (chunk, G) HBM writeback is contiguous full rows.
        out_ref[pl.ds(s, chunk), :] = g.T.astype(out_ref.dtype)
        return carry

    jax.lax.fori_loop(0, n_chunks, body, 0, unroll=(n_chunks <= 4))


def grasp_encoder(grasp, params, tile_b=8192, out_dtype=jnp.bfloat16):
    """GraspEncoder forward.

    grasp: (B, 2) float32. Returns (B, grasp_encoder_dim) in `out_dtype`.
    Weights are in native PyTorch layout: W = (out_features, in_features),
    biases stored as (out_features, 1) columns (broadcast along lanes).
    """
    w1, b1, w2, b2, w3, b3 = params
    B = grasp.shape[0]
    G = w3.shape[0]

    # Batch tile on the lane axis (multiple of 128), capped near B for small
    # batches so padded garbage rows don't waste write bandwidth.
    tile = min(_round_up(tile_b, 128), _round_up(B, 128))
    # Keep the grid >= 2 steps so ("parallel",) can split the batch across
    # v7x's two TensorCores (harmless on v5e/v6e).
    if _round_up(B, tile) // tile < 2 and tile > 128:
        tile = _round_up(tile // 2, 128)
    B_pad = _round_up(B, tile)

    # Feature-major, zero-padded input (one small fused pad+transpose; only
    # ~8 B/elem vs the 64+ B/elem output stream).
    # TODO(synk): this last HBM round-trip could be removed with
    # allow_input_fusion or an in-kernel (tile, 2) -> (2, tile) swizzle.
    xT = jnp.zeros((2, B_pad), jnp.float32).at[:, :B].set(
        grasp.T.astype(jnp.float32))

    vmem = pltpu.MemorySpace.VMEM

    def resident(a):
        # Whole array VMEM-resident; constant index_map -> DMA'd only once.
        # TODO(synk): pipeline_mode=pl.Buffered(1) would drop the redundant
        # second buffer (~4 KiB per weight); omitted for lowering portability.
        return pl.BlockSpec(a.shape, lambda i: (0,) * a.ndim, memory_space=vmem)

    grid = (B_pad // tile,)
    out = pl.pallas_call(
        grasp_encoder_kernel,
        out_shape=jax.ShapeDtypeStruct((B_pad, G), out_dtype),
        grid=grid,
        in_specs=[
            pl.BlockSpec((2, tile), lambda i: (0, i), memory_space=vmem),
            resident(w1), resident(b1),
            resident(w2), resident(b2),
            resident(w3), resident(b3),
        ],
        out_specs=pl.BlockSpec((tile, G), lambda i: (i, 0), memory_space=vmem),
        compiler_params=pltpu.CompilerParams(
            dimension_semantics=("parallel",)),
    )(xT, w1, b1, w2, b2, w3, b3)

    # Already batch-major: just crop the padded rows (no transpose).
    return out[:B]


def init_params(key, in_dim=2, hidden_dim=32, part_encoder_dim=32,
                grasp_encoder_dim=32):
    """Deterministic synthetic parameters, PyTorch nn.Linear layout/init."""
    ks = jax.random.split(key, 6)

    def lin(kw, kb, fan_in, fan_out):
        bound = 1.0 / jnp.sqrt(fan_in)
        w = jax.random.uniform(kw, (fan_out, fan_in), jnp.float32, -bound, bound)
        b = jax.random.uniform(kb, (fan_out, 1), jnp.float32, -bound, bound)
        return w, b

    w1, b1 = lin(ks[0], ks[1], in_dim, hidden_dim)
    w2, b2 = lin(ks[2], ks[3], hidden_dim, part_encoder_dim)
    w3, b3 = lin(ks[4], ks[5], part_encoder_dim, grasp_encoder_dim)
    return (w1, b1, w2, b2, w3, b3)


def reference(grasp, params):
    w1, b1, w2, b2, w3, b3 = params
    hp = jax.lax.Precision.HIGHEST
    h = jnp.maximum(jnp.dot(grasp, w1.T, precision=hp) + b1.T, 0.0)
    p = jnp.maximum(jnp.dot(h, w2.T, precision=hp) + b2.T, 0.0)
    return jnp.maximum(jnp.dot(p, w3.T, precision=hp) + b3.T, 0.0)


if __name__ == "__main__":
    key = jax.random.PRNGKey(0)
    k_x1, k_x2, k_p = jax.random.split(key, 3)

    params = init_params(k_p, in_dim=2, hidden_dim=32,
                         part_encoder_dim=32, grasp_encoder_dim=32)

    # Test 1: ragged small batch (padding + 2-step grid), f32 output for a
    # tight parity check against the reference.
    B1 = 300
    grasp1 = jax.random.normal(k_x1, (B1, 2), jnp.float32)
    out1 = jax.block_until_ready(
        grasp_encoder(grasp1, params, out_dtype=jnp.float32))
    ref1 = reference(grasp1, params)
    assert out1.shape == (B1, 32)
    err1 = float(jnp.max(jnp.abs(out1 - ref1)))
    assert jnp.allclose(out1, ref1, atol=1e-4, rtol=1e-4), err1

    # Test 2: larger batch, default bf16 output, multi-sub-chunk inner loop.
    B2 = 2048
    grasp2 = jax.random.normal(k_x2, (B2, 2), jnp.float32)
    out2 = jax.block_until_ready(grasp_encoder(grasp2, params, tile_b=2048))
    ref2 = reference(grasp2, params)
    assert out2.shape == (B2, 32) and out2.dtype == jnp.bfloat16
    err2 = float(jnp.max(jnp.abs(out2.astype(jnp.float32) - ref2)))
    assert err2 < 3e-2, err2

    print("KERNEL_OK")
</pallas_src>

<mosaic_0001>
module attributes {stable_mosaic.version = 11 : i64} {
  func.func @grasp_encoder_kernel(%arg0: i32, %arg1: memref<2x256xf32, #tpu.memory_space<vmem>>, %arg2: memref<32x2xf32, #tpu.memory_space<vmem>>, %arg3: memref<32x1xf32, #tpu.memory_space<vmem>>, %arg4: memref<32x32xf32, #tpu.memory_space<vmem>>, %arg5: memref<32x1xf32, #tpu.memory_space<vmem>>, %arg6: memref<32x32xf32, #tpu.memory_space<vmem>>, %arg7: memref<32x1xf32, #tpu.memory_space<vmem>>, %arg8: memref<256x32xf32, #tpu.memory_space<vmem>>) attributes {dimension_semantics = [#tpu.dimension_semantics<parallel>], iteration_bounds = array<i64: 2>, scalar_prefetch = 0 : i64, scratch_operands = 0 : i64, tpu.core_type = #tpu.core_type<tc>, window_params = [{transform_indices = @transform_0, window_bounds = array<i64: 2, 256>}, {pipeline_mode = #tpu.pipeline_mode<synchronous>, transform_indices = @transform_1, window_bounds = array<i64: 32, 2>}, {pipeline_mode = #tpu.pipeline_mode<synchronous>, transform_indices = @transform_2, window_bounds = array<i64: 32, 1>}, {pipeline_mode = #tpu.pipeline_mode<synchronous>, transform_indices = @transform_3, window_bounds = array<i64: 32, 32>}, {pipeline_mode = #tpu.pipeline_mode<synchronous>, transform_indices = @transform_4, window_bounds = array<i64: 32, 1>}, {pipeline_mode = #tpu.pipeline_mode<synchronous>, transform_indices = @transform_5, window_bounds = array<i64: 32, 32>}, {pipeline_mode = #tpu.pipeline_mode<synchronous>, transform_indices = @transform_6, window_bounds = array<i64: 32, 1>}, {transform_indices = @transform_7, window_bounds = array<i64: 256, 32>}]} {
    %c0 = arith.constant 0 : index
    %c0_0 = arith.constant 0 : index
    %0 = vector.load %arg2[%c0, %c0_0] : memref<32x2xf32, #tpu.memory_space<vmem>>, vector<32x2xf32>
    %1 = vector.extract_strided_slice %0 {offsets = [0, 0], sizes = [32, 1], strides = [1, 1]} : vector<32x2xf32> to vector<32x1xf32>
    %2 = vector.extract_strided_slice %0 {offsets = [0, 1], sizes = [32, 1], strides = [1, 1]} : vector<32x2xf32> to vector<32x1xf32>
    %c0_1 = arith.constant 0 : index
    %c0_2 = arith.constant 0 : index
    %3 = vector.load %arg3[%c0_1, %c0_2] : memref<32x1xf32, #tpu.memory_space<vmem>>, vector<32x1xf32>
    %c0_3 = arith.constant 0 : index
    %c0_4 = arith.constant 0 : index
    %4 = vector.load %arg4[%c0_3, %c0_4] : memref<32x32xf32, #tpu.memory_space<vmem>>, vector<32x32xf32>
    %c0_5 = arith.constant 0 : index
    %c0_6 = arith.constant 0 : index
    %5 = vector.load %arg5[%c0_5, %c0_6] : memref<32x1xf32, #tpu.memory_space<vmem>>, vector<32x1xf32>
    %c0_7 = arith.constant 0 : index
    %c0_8 = arith.constant 0 : index
    %6 = vector.load %arg6[%c0_7, %c0_8] : memref<32x32xf32, #tpu.memory_space<vmem>>, vector<32x32xf32>
    %c0_9 = arith.constant 0 : index
    %c0_10 = arith.constant 0 : index
    %7 = vector.load %arg7[%c0_9, %c0_10] : memref<32x1xf32, #tpu.memory_space<vmem>>, vector<32x1xf32>
    %c0_i32 = arith.constant 0 : i32
    %c256_i32 = arith.constant 256 : i32
    %8 = arith.muli %c0_i32, %c256_i32 : i32
    %9 = tpu.assume_multiple %8, 128 : i32
    %c0_11 = arith.constant 0 : index
    %10 = arith.index_cast %9 : i32 to index
    %11 = vector.load %arg1[%c0_11, %10] : memref<2x256xf32, #tpu.memory_space<vmem>>, vector<2x256xf32>
    %12 = vector.extract_strided_slice %11 {offsets = [0, 0], sizes = [1, 256], strides = [1, 1]} : vector<2x256xf32> to vector<1x256xf32>
    %13 = vector.broadcast %1 : vector<32x1xf32> to vector<32x256xf32>
    %14 = vector.broadcast %12 : vector<1x256xf32> to vector<32x256xf32>
    %15 = arith.mulf %13, %14 : vector<32x256xf32>
    %16 = vector.extract_strided_slice %11 {offsets = [1, 0], sizes = [1, 256], strides = [1, 1]} : vector<2x256xf32> to vector<1x256xf32>
    %17 = vector.broadcast %2 : vector<32x1xf32> to vector<32x256xf32>
    %18 = vector.broadcast %16 : vector<1x256xf32> to vector<32x256xf32>
    %19 = arith.mulf %17, %18 : vector<32x256xf32>
    %20 = arith.addf %15, %19 : vector<32x256xf32>
    %21 = vector.broadcast %3 : vector<32x1xf32> to vector<32x256xf32>
    %22 = arith.addf %20, %21 : vector<32x256xf32>
    %cst = arith.constant 0.000000e+00 : f32
    %23 = vector.broadcast %cst : f32 to vector<32x256xf32>
    %24 = arith.maximumf %22, %23 : vector<32x256xf32>
    %cst_12 = arith.constant dense<0.000000e+00> : vector<32x256xf32>
    %25 = tpu.matmul %4, %24, %cst_12 {dimension_numbers = #tpu.dot_dimension_numbers<[1], [0], [0], [1], [0, 0, 1, 1], [], []>, precision = #tpu.contract_precision<fp32>} : vector<32x32xf32>, vector<32x256xf32>, vector<32x256xf32> -> vector<32x256xf32>
    %26 = vector.broadcast %5 : vector<32x1xf32> to vector<32x256xf32>
    %27 = arith.addf %25, %26 : vector<32x256xf32>
    %cst_13 = arith.constant 0.000000e+00 : f32
    %28 = vector.broadcast %cst_13 : f32 to vector<32x256xf32>
    %29 = arith.maximumf %27, %28 : vector<32x256xf32>
    %cst_14 = arith.constant dense<0.000000e+00> : vector<32x256xf32>
    %30 = tpu.matmul %6, %29, %cst_14 {dimension_numbers = #tpu.dot_dimension_numbers<[1], [0], [0], [1], [0, 0, 1, 1], [], []>, precision = #tpu.contract_precision<fp32>} : vector<32x32xf32>, vector<32x256xf32>, vector<32x256xf32> -> vector<32x256xf32>
    %31 = vector.broadcast %7 : vector<32x1xf32> to vector<32x256xf32>
    %32 = arith.addf %30, %31 : vector<32x256xf32>
    %cst_15 = arith.constant 0.000000e+00 : f32
    %33 = vector.broadcast %cst_15 : f32 to vector<32x256xf32>
    %34 = arith.maximumf %32, %33 : vector<32x256xf32>
    %35 = tpu.transpose %34, [1, 0] : vector<32x256xf32> -> vector<256x32xf32>
    %36 = arith.index_cast %9 : i32 to index
    %c0_16 = arith.constant 0 : index
    %37 = vector.load %arg8[%36, %c0_16] : memref<256x32xf32, #tpu.memory_space<vmem>>, vector<256x32xf32>
    tpu.vector_store %arg8[%36, %c0_16], %35 {strides = array<i32>} : memref<256x32xf32, #tpu.memory_space<vmem>>, vector<256x32xf32>,
    %c1_i32 = arith.constant 1 : i32
    return
  }
  func.func @transform_0(%arg0: i32) -> (i32, i32) {
    %c0_i32 = arith.constant 0 : i32
    %c0_i32_0 = arith.constant 0 : i32
    return %c0_i32, %arg0 : i32, i32
  }
  func.func @transform_1(%arg0: i32) -> (i32, i32) {
    %c0_i32 = arith.constant 0 : i32
    %c0_i32_0 = arith.constant 0 : i32
    %c0_i32_1 = arith.constant 0 : i32
    return %c0_i32, %c0_i32_0 : i32, i32
  }
  func.func @transform_2(%arg0: i32) -> (i32, i32) {
    %c0_i32 = arith.constant 0 : i32
    %c0_i32_0 = arith.constant 0 : i32
    %c0_i32_1 = arith.constant 0 : i32
    return %c0_i32, %c0_i32_0 : i32, i32
  }
  func.func @transform_3(%arg0: i32) -> (i32, i32) {
    %c0_i32 = arith.constant 0 : i32
    %c0_i32_0 = arith.constant 0 : i32
    %c0_i32_1 = arith.constant 0 : i32
    return %c0_i32, %c0_i32_0 : i32, i32
  }
  func.func @transform_4(%arg0: i32) -> (i32, i32) {
    %c0_i32 = arith.constant 0 : i32
    %c0_i32_0 = arith.constant 0 : i32
    %c0_i32_1 = arith.constant 0 : i32
    return %c0_i32, %c0_i32_0 : i32, i32
  }
  func.func @transform_5(%arg0: i32) -> (i32, i32) {
    %c0_i32 = arith.constant 0 : i32
    %c0_i32_0 = arith.constant 0 : i32
    %c0_i32_1 = arith.constant 0 : i32
    return %c0_i32, %c0_i32_0 : i32, i32
  }
  func.func @transform_6(%arg0: i32) -> (i32, i32) {
    %c0_i32 = arith.constant 0 : i32
    %c0_i32_0 = arith.constant 0 : i32
    %c0_i32_1 = arith.constant 0 : i32
    return %c0_i32, %c0_i32_0 : i32, i32
  }
  func.func @transform_7(%arg0: i32) -> (i32, i32) {
    %c0_i32 = arith.constant 0 : i32
    %c0_i32_0 = arith.constant 0 : i32
    return %arg0, %c0_i32 : i32, i32
  }
}

</mosaic_0001>

<bundles_post_ra>
// kernel: tpu_custom_call.1
= control target key start
LH: loop header
LB: loop body
LE: loop exit
PB: predicated region body
PF: predicated region fallthrough
CT: control target
= control target key end

     0   :  { %s1842_s24 = smov 0   ;;  %s2332_s0 = inlined_call_operand.vmem [shape: f32[2,512], index: 0, kind: input, shape index: {}]   ;;  %s2333_s1 = inlined_call_operand.vmem [shape: f32[32,2], index: 1, kind: input, shape index: {}]   ;;  %s2334_s2 = inlined_call_operand.vmem [shape: f32[32,1], index: 2, kind: input, shape index: {}]   ;;  %s2335_s3 = inlined_call_operand.vmem [shape: f32[32,32], index: 3, kind: input, shape index: {}]   ;;  %s2336_s4 = inlined_call_operand.vmem [shape: f32[32,1], index: 4, kind: input, shape index: {}]   ;;  %s2337_s5 = inlined_call_operand.vmem [shape: f32[32,32], index: 5, kind: input, shape index: {}]   ;;  %s2338_s6 = inlined_call_operand.vmem [shape: f32[32,1], index: 6, kind: input, shape index: {}]   ;;  %s2339_s7 = inlined_call_operand.vmem [shape: f32[512,32], index: 7, kind: output, shape index: {}]  }
   0x1 LB: > { %s1761_s25 = sadd.s32 4294967295, %s1798_s24   ;;  %p1765_p0 = scmp.ge.s32.totalorder %s1798_s24, 1  ;;  %s1798_s24 = sphi %s1842_s24, %s17_s24  }
   0x2   : > { %p238_p1 = scmp.lt.s32.totalorder %s1798_s24, 3 }
   0x4   : > { %p239_p2 = pnand %p1765_p0, %p238_p1 }
   0x5   : > { %s1766_s14 = sshll.u32 (!%p239_p2), %s1761_s25, 1 }
   0x6   : > { %242 = sbr.rel (%p239_p2) target bundleno = 861 (0x35d), region = 48  ;;  %p271_p3 = scmp.lt.s32.totalorder (!%p239_p2), %s1766_s14, 3 }
   0xb   : > { %v285_v0 = vld [vmem:[%s2333_s1 + $0x18] sm:$0xff]  ;;  %v284_v1 = vld [vmem:[%s2333_s1 + $0x10] sm:$0xff]  ;;  %v283_v2 = vld [vmem:[%s2333_s1 + $0x8] sm:$0xff]  ;;  %v1800_v3 = vmov 0   ;;  %v1801_v4 = vmov 1   ;;  %s2341_s14 = smov (!%p271_p3, %s1766_s14), 3 }
   0xc   : > { %1787 = vset.pattern.permute.xlu2 %v1800_v3  ;;  %1785 = vset.pattern.permute.xlu1 %v1800_v3  ;;  %v282_v5 = vld [vmem:[%s2333_s1] sm:$0xff]  ;;  %v289_v6 = vld [vmem:[%s2334_s2 + $0x18] sm:$0xff]  ;;  %v288_v7 = vld [vmem:[%s2334_s2 + $0x10] sm:$0xff]  ;;  %s1767_s15 = sshll.u32 %s2341_s14, 1  ;;  %vm436_vm0 = vcmask 261120   ;;  %s1768_s14 = sshll.u32 %s1761_s25, 5 }
   0xd   : > { %1783 = vset.pattern.permute.xlu0 %v1800_v3  ;;  %319 = vperm.xlu1 %1785, %v284_v1   ;;  %v286_v8 = vld [vmem:[%s2334_s2] sm:$0xff]  ;;  %v287_v9 = vld [vmem:[%s2334_s2 + $0x8] sm:$0xff]  ;;  %v297_v10 = vld [vmem:[%s2336_s4 + $0x18] sm:$0xff]  ;;  %s274_s18 = scalar_lea.vmem %s2332_s0, %s1767_s15  ;;  %p277_p4 = scmp.lt.s32.totalorder %s1768_s14, 63 }
   0xe   : > { %324 = vperm.xlu0 %1783, %v285_v0   ;;  %314 = vperm.xlu2 %1787, %v283_v2   ;;  %v302_v11 = vld [vmem:[%s2338_s6] sm:$0xff]  ;;  %v296_v12 = vld [vmem:[%s2336_s4 + $0x10] sm:$0xff]  ;;  %v295_v13 = vld [vmem:[%s2336_s4 + $0x8] sm:$0xff] }
   0xf   : > { %v305_v14 = vld [vmem:[%s2338_s6 + $0x18] sm:$0xff]  ;;  %v294_v15 = vld [vmem:[%s2336_s4] sm:$0xff]  ;;  %v303_v16 = vld [vmem:[%s2338_s6 + $0x8] sm:$0xff]  ;;  %s2343_s14 = smov (!%p277_p4, %s1768_s14), 63 }
  0x10   : > { %v304_v17 = vld [vmem:[%s2338_s6 + $0x10] sm:$0xff]  ;;  %v306_v20 = vld [vmem:[%s274_s18] sm:$0xf]  ;;  %s1769_s15 = sshll.u32 %s2343_s14, 3 }
  0x11   : > { %v328_v23 = vperm.slane %v306_v20, 0  ;;  %v329_v24 = vperm.slane %v306_v20, 2  ;;  %v358_v25 = vperm.slane %v306_v20, 1  ;;  %v359_v26 = vperm.slane %v306_v20, 3  ;;  %v290_v38 = vld [vmem:[%s2335_s3] sm:$0xff]  ;;  %s2263_s18 = scalar_lea.vmem %s2339_s7, %s1769_s15 }
  0x12   : > { %v438_v46 = vsel %vm436_vm0, %v290_v38, 0 }
  0x13   : > { %v332_v28 = vperm.slane %v328_v23, 0  ;;  %v333_v29 = vperm.slane %v329_v24, 0  ;;  %v362_v30 = vperm.slane %v358_v25, 1  ;;  %v363_v31 = vperm.slane %v359_v26, 1 }
  0x14   : > { %v1907_v53 = vand.u32 4294901760, %v438_v46 }
  0x15   : > { %1786 = vset.pattern.permute.xlu1 %v1801_v4 }
  0x16   : > { %1784 = vset.pattern.permute.xlu0 %v1801_v4  ;;  %1788 = vset.pattern.permute.xlu2 %v1801_v4  ;;  %v1910_v4 = vsub.f32 %v438_v46, %v1907_v53 }
  0x17   : > { %355 = vperm.xlu0 %1784, %v285_v0   ;;  %351 = vperm.xlu1 %1786, %v284_v1  }
  0x18   : > { %347 = vperm.xlu2 %1788, %v283_v2  }
  0x1f   : > { %1789 = vset.pattern.permute.xlu1 %v1800_v3  ;;  %343 = vperm.xlu0 %1784, %v282_v5  }
  0x20   : > { %1790 = vset.pattern.permute.xlu2 %v1800_v3  ;;  %397 = vperm.xlu1 %1789, %v289_v6  }
  0x21   : > { %309 = vperm.xlu2 %1790, %v282_v5   ;;  %v291_v5 = vld [vmem:[%s2335_s3 + $0x8] sm:$0xff] }
  0x27   : > { %1791 = vset.pattern.permute.xlu0 %v1800_v3 }
  0x28   : > { %392 = vperm.xlu1 %1789, %v288_v7   ;;  %382 = vperm.xlu0 %1791, %v286_v8  }
  0x29   : > { %387 = vperm.xlu2 %1790, %v287_v9  }
  0x30   : > { %433 = vperm.xlu1 %1789, %v297_v10   ;;  %1015 = vperm.xlu0 %1791, %v302_v11  }
  0x31   : > { %428 = vperm.xlu2 %1790, %v296_v12  }
  0x38   : > { %423 = vperm.xlu1 %1789, %v295_v13   ;;  %1030 = vperm.xlu0 %1791, %v305_v14   ;;  %v441_v14 = vsel %vm436_vm0, %v291_v5, 0 }
  0x39   : > { %418 = vperm.xlu2 %1790, %v294_v15   ;;  %v1934_v26 = vand.u32 4294901760, %v441_v14 }
  0x40   : > { %1020 = vperm.xlu1 %1789, %v303_v16  }
  0x41   : > { %1025 = vperm.xlu2 %1790, %v304_v17  }
  0x68   : > { %v315_v18 = vpop.permute.xlu2 %314 }
  0x69   : > { %v336_v34 = vmul.f32 %v332_v28, %v315_v18  ;;  %v337_v35 = vmul.f32 %v333_v29, %v315_v18 }
  0x72   : > { %v348_v19 = vpop.permute.xlu2 %347 }
  0x73   : > { %v366_v36 = vmul.f32 %v362_v30, %v348_v19  ;;  %v367_v37 = vmul.f32 %v363_v31, %v348_v19  ;;  %v1931_v19 = vand.u32 4294901760, %v1910_v4 }
  0x75   : > { %v374_v41 = vadd.f32 %v366_v36, %v336_v34  ;;  %v375_v42 = vadd.f32 %v367_v37, %v337_v35  ;;  %v472_v34 = vsub.f32 %v1910_v4, %v1931_v19 }
  0x77   : > { %v1968_v46 = vand.u32 4294901760, %v472_v34 }
  0x7b   : > { %v310_v27 = vpop.permute.xlu2 %309 }
  0x7c   : > { %v334_v54 = vmul.f32 %v332_v28, %v310_v27  ;;  %v335_v57 = vmul.f32 %v333_v29, %v310_v27 }
  0x7f   : > { %v320_v21 = vpop.permute.xlu1 %319 }
  0x80   : > { %v325_v22 = vpop.permute.xlu0 %324  ;;  %v338_v61 = vmul.f32 %v332_v28, %v320_v21  ;;  %v339_v1 = vmul.f32 %v333_v29, %v320_v21 }
  0x81   : > { %v340_v43 = vmul.f32 %v332_v28, %v325_v22  ;;  %v341_v44 = vmul.f32 %v333_v29, %v325_v22 }
  0x83   : > { %v388_v45 = vpop.permute.xlu2 %387 }
  0x84   : > { %v402_v50 = vadd.f32 %v388_v45, %v374_v41  ;;  %v403_v51 = vadd.f32 %v388_v45, %v375_v42  ;;  %v1954_v41 = vsub.f32 %v441_v14, %v1934_v26  ;;  %v292_v42 = vld [vmem:[%s2335_s3 + $0x10] sm:$0xff] }
  0x86   : > { %v410_v2 = vmax.f32 %v402_v50, 0.0  ;;  %v411_v3 = vmax.f32 %v403_v51, 0.0 }
  0x88   : > { %v1926_v15 = vand.u32 4294901760, %v410_v2  ;;  %v1928_v16 = vand.u32 4294901760, %v411_v3 }
  0x89   : > { %v356_v32 = vpop.permute.xlu0 %355  ;;  %v352_v33 = vpop.permute.xlu1 %351 }
  0x8a   : > { %v370_v39 = vmul.f32 %v362_v30, %v356_v32  ;;  %v371_v40 = vmul.f32 %v363_v31, %v356_v32  ;;  %v368_v58 = vmul.f32 %v362_v30, %v352_v33  ;;  %v369_v59 = vmul.f32 %v363_v31, %v352_v33 }
  0x8b   : > { %v527_v33 = vsub.f32 %v410_v2, %v1926_v15 }
  0x8c   : > { %v378_v48 = vadd.f32 %v370_v39, %v340_v43  ;;  %v379_v49 = vadd.f32 %v371_v40, %v341_v44  ;;  %v376_v8 = vadd.f32 %v368_v58, %v338_v61  ;;  %v377_v9 = vadd.f32 %v369_v59, %v339_v1 }
  0x91   : > { %v344_v47 = vpop.permute.xlu0 %343 }
  0x92   : > { %v398_v52 = vpop.permute.xlu1 %397  ;;  %v364_v60 = vmul.f32 %v362_v30, %v344_v47  ;;  %v365_v62 = vmul.f32 %v363_v31, %v344_v47  ;;  %v1937_v31 = vsub.f32 %v411_v3, %v1928_v16  ;;  %v293_v3 = vld [vmem:[%s2335_s3 + $0x18] sm:$0xff] }
  0x93   : > { %v406_v55 = vadd.f32 %v398_v52, %v378_v48  ;;  %v407_v56 = vadd.f32 %v398_v52, %v379_v49  ;;  %v528_v48 = vand.u32 4294901760, %v527_v33  ;;  %v444_v52 = vsel %vm436_vm0, %v292_v42, 0 }
  0x94   : > { %v372_v10 = vadd.f32 %v364_v60, %v334_v54  ;;  %v373_v12 = vadd.f32 %v365_v62, %v335_v57  ;;  %v806_v51 = vand.u32 4294901760, %v1937_v31  ;;  %v1984_v61 = vand.u32 4294901760, %v444_v52 }
  0x95   : > { %v414_v63 = vmax.f32 %v406_v55, 0.0  ;;  %v415_v0 = vmax.f32 %v407_v56, 0.0  ;;  %v1977_v55 = vand.u32 4294901760, %v1954_v41  ;;  %v529_v60 = vsub.f32 %v527_v33, %v528_v48 }
  0x97   : > { %v1915_v6 = vand.u32 4294901760, %v414_v63  ;;  %v1917_v7 = vand.u32 4294901760, %v415_v0  ;;  %v480_v2 = vsub.f32 %v1954_v41, %v1977_v55 }
  0x99   : > { %v1920_v11 = vsub.f32 %v415_v0, %v1917_v7  ;;  %462 = vmatpush.msra.mxu0 %v1915_v6  ;;  %613 = vmatpush.msra.mxu3 %v1915_v6  ;;  %v515_v13 = vsub.f32 %v414_v63, %v1915_v6  ;;  %v807_v0 = vsub.f32 %v1937_v31, %v806_v51  ;;  %v481_v14 = vand.u32 4294901760, %v480_v2 }
  0x9a   : > { %v393_v17 = vpop.permute.xlu1 %392  ;;  %v383_v18 = vpop.permute.xlu0 %382 }
  0x9b   : > { %v404_v20 = vadd.f32 %v393_v17, %v376_v8  ;;  %v405_v21 = vadd.f32 %v393_v17, %v377_v9  ;;  %v400_v22 = vadd.f32 %v383_v18, %v372_v10  ;;  %v401_v23 = vadd.f32 %v383_v18, %v373_v12  ;;  %569 = vmatpush.msra.mxu2 %v515_v13 }
  0x9c   : > { %v516_v24 = vand.u32 4294901760, %v515_v13  ;;  %v794_v25 = vand.u32 4294901760, %v1920_v11  ;;  %v530_v8 = vand.u32 4294901760, %v529_v60  ;;  %v1999_v9 = vsub.f32 %v444_v52, %v1984_v61 }
  0x9d   : > { %v412_v27 = vmax.f32 %v404_v20, 0.0  ;;  %v413_v28 = vmax.f32 %v405_v21, 0.0  ;;  %v408_v29 = vmax.f32 %v400_v22, 0.0  ;;  %v409_v30 = vmax.f32 %v401_v23, 0.0 }
  0x9e   : > { %v517_v32 = vsub.f32 %v515_v13, %v516_v24  ;;  %v795_v40 = vsub.f32 %v1920_v11, %v794_v25  ;;  %v808_v10 = vand.u32 4294901760, %v807_v0  ;;  %v447_v12 = vsel %vm436_vm0, %v293_v3, 0 }
  0x9f   : > { %v1942_v35 = vand.u32 4294901760, %v412_v27  ;;  %v1944_v36 = vand.u32 4294901760, %v413_v28  ;;  %v1946_v37 = vand.u32 4294901760, %v408_v29  ;;  %v1948_v38 = vand.u32 4294901760, %v409_v30 }
  0xa0   : > { %v518_v39 = vand.u32 4294901760, %v517_v32  ;;  %v796_v56 = vand.u32 4294901760, %v795_v40  ;;  %v2005_v18 = vand.u32 4294901760, %v1999_v9  ;;  %v2007_v20 = vand.u32 4294901760, %v447_v12 }
  0xa1   : > { %v1960_v43 = vsub.f32 %v413_v28, %v1944_v36  ;;  %v1963_v44 = vsub.f32 %v409_v30, %v1948_v38  ;;  %464 = vmatpush.msra.mxu0 %v1942_v35  ;;  %615 = vmatpush.msra.mxu3 %v1942_v35  ;;  %v521_v45 = vsub.f32 %v412_v27, %v1942_v35 }
  0xa2   : > { %519 = vmatpush.msra.mxu1 %v518_v39  ;;  %v533_v47 = vsub.f32 %v408_v29, %v1946_v37  ;;  %v488_v21 = vsub.f32 %v1999_v9, %v2005_v18  ;;  %v494_v22 = vsub.f32 %v447_v12, %v2007_v20  ;;  %v2068_v34 = vpop.permute.xlu1 %433 }
  0xa3   : > { %466 = vmatpush.msra.mxu0 %v1926_v15  ;;  %572 = vmatpush.msra.mxu2 %v521_v45  ;;  %v522_v49 = vand.u32 4294901760, %v521_v45  ;;  %v800_v50 = vand.u32 4294901760, %v1960_v43  ;;  %v812_v59 = vand.u32 4294901760, %v1963_v44 }
  0xa4   : > { %617 = vmatpush.msra.mxu3 %v1926_v15  ;;  %v534_v54 = vand.u32 4294901760, %v533_v47  ;;  %v495_v23 = vand.u32 4294901760, %v494_v22 }
  0xa5   : > { %468 = vmatpush.msra.mxu0 %v1946_v37  ;;  %575 = vmatpush.msra.mxu2 %v527_v33  ;;  %v523_v57 = vsub.f32 %v521_v45, %v522_v49  ;;  %v801_v58 = vsub.f32 %v1960_v43, %v800_v50  ;;  %v813_v5 = vsub.f32 %v1963_v44, %v812_v59 }
  0xa6   : > { %619 = vmatpush.msra.mxu3 %v1946_v37  ;;  %474 = vmatmul.f32.vlgmr.msra.gmra.mxu0 %v1968_v46  ;;  %v535_v1 = vsub.f32 %v533_v47, %v534_v54 }
  0xa7   : > { %660 = vmatpush.msrb.mxu0 %v516_v24  ;;  %v524_v62 = vand.u32 4294901760, %v523_v57  ;;  %v802_v63 = vand.u32 4294901760, %v801_v58  ;;  %578 = vmatpush.msra.mxu2 %v533_v47  ;;  %v814_v17 = vand.u32 4294901760, %v813_v5 }
  0xa8   : > { %797 = vmatpush.msrb.mxu3 %v796_v56  ;;  %581 = vmatmul.f32.vlgmr.msra.gmra.mxu2 %v1910_v4  ;;  %v536_v13 = vand.u32 4294901760, %v535_v1 }
  0xa9   : > { %623 = vmatmul.f32.vlgmr.msra.gmra.mxu3 %v1931_v19  ;;  %664 = vmatpush.msrb.mxu0 %v522_v49 }
  0xaa   : > { %740 = vmatpush.msrb.mxu2 %v1917_v7  ;;  %525 = vmatpush.msra.mxu1 %v524_v62  ;;  %v2076_v42 = vpop.permute.xlu1 %423 }
  0xab   : > { %803 = vmatpush.msrb.mxu3 %v802_v63  ;;  %668 = vmatpush.msrb.mxu0 %v528_v48 }
  0xac   : > { %742 = vmatpush.msrb.mxu2 %v1944_v36  ;;  %531 = vmatpush.msra.mxu1 %v530_v8 }
  0xad   : > { %809 = vmatpush.msrb.mxu3 %v808_v10  ;;  %672 = vmatpush.msrb.mxu0 %v534_v54 }
  0xae   : > { %744 = vmatpush.msrb.mxu2 %v1928_v16  ;;  %537 = vmatpush.msra.mxu1 %v536_v13 }
  0xaf   : > { %815 = vmatpush.msrb.mxu3 %v814_v17  ;;  %847 = vmatpush.msra.mxu0 %v1920_v11  ;;  %v496_v11 = vsub.f32 %v494_v22, %v495_v23 }
  0xb0   : > { %482 = vmatmul.f32.gmra.mxu0 %v481_v14  ;;  %539 = vmatmul.f32.vlgmr.msra.gmra.mxu1 %v1907_v53 }
  0xb1   : > { %703 = vmatpush.msrb.mxu1 %v1915_v6  ;;  %746 = vmatpush.msrb.mxu2 %v1948_v38  ;;  %v489_v6 = vand.u32 4294901760, %v488_v21  ;;  %v299_v21 = vld [vmem:[%s2337_s5 + $0x8] sm:$0xff] }
  0xb2   : > { %981 = vmatpush.msra.mxu3 %v1917_v7  ;;  %850 = vmatpush.msra.mxu0 %v1960_v43 }
  0xb3   : > { %938 = vmatpush.msra.mxu2 %v794_v25  ;;  %705 = vmatpush.msrb.mxu1 %v1942_v35 }
  0xb4   : > { %586 = vmatmul.f32.gmra.mxu2 %v1954_v41  ;;  %983 = vmatpush.msra.mxu3 %v1944_v36 }
  0xb5   : > { %853 = vmatpush.msra.mxu0 %v1937_v31  ;;  %942 = vmatpush.msra.mxu2 %v800_v50 }
  0xb6   : > { %629 = vmatmul.f32.gmra.mxu3 %v1977_v55  ;;  %707 = vmatpush.msrb.mxu1 %v1926_v15  ;;  %v497_v15 = vand.u32 4294901760, %v496_v11 }
  0xb7   : > { %985 = vmatpush.msra.mxu3 %v1928_v16  ;;  %856 = vmatpush.msra.mxu0 %v1963_v44 }
  0xb8   : > { %946 = vmatpush.msra.mxu2 %v806_v51  ;;  %709 = vmatpush.msrb.mxu1 %v1946_v37  ;;  %v2070_v37 = vpop.permute.xlu2 %428 }
  0xb9   : > { %987 = vmatpush.msra.mxu3 %v1948_v38  ;;  %490 = vmatmul.f32.gmra.mxu0 %v489_v6 }
  0xba   : > { %891 = vmatpush.msra.mxu1 %v1917_v7  ;;  %950 = vmatpush.msra.mxu2 %v812_v59  ;;  %v298_v59 = vld [vmem:[%s2337_s5] sm:$0xff] }
  0xbb   : > { %543 = vmatmul.f32.gmra.mxu1 %v1934_v26  ;;  %v1034_v5 = vsel %vm436_vm0, %v298_v59, 0 }
  0xbc   : > { %893 = vmatpush.msra.mxu1 %v1944_v36  ;;  %591 = vmatmul.f32.gmra.mxu2 %v1999_v9  ;;  %v2096_v17 = vand.u32 4294901760, %v1034_v5 }
  0xbe   : > { %895 = vmatpush.msra.mxu1 %v1928_v16  ;;  %635 = vmatmul.f32.gmra.mxu3 %v2005_v18 }
  0xc0   : > { %897 = vmatpush.msra.mxu1 %v1948_v38  ;;  %v2080_v45 = vpop.permute.xlu2 %418 }
  0xc1   : > { %498 = vmatmul.f32.gmra.mxu0 %v497_v15 }
  0xc3   : > { %547 = vmatmul.f32.gmra.mxu1 %v1984_v61 }
  0xc4   : > { %596 = vmatmul.f32.gmra.mxu2 %v494_v22 }
  0xc6   : > { %641 = vmatmul.f32.gmra.mxu3 %v495_v23 }
  0xc9   : > { %674 = vmatmul.f32.vlgmr.msrb.gmra.mxu0 %v1907_v53 }
  0xcb   : > { %551 = vmatmul.f32.gmra.mxu1 %v2007_v20 }
  0xcc   : > { %752 = vmatmul.f32.vlgmr.msrb.gmra.mxu2 %v1968_v46 }
  0xce   : > { %817 = vmatmul.f32.vlgmr.msrb.gmra.mxu3 %v1907_v53 }
  0xd1   : > { %678 = vmatmul.f32.gmra.mxu0 %v1934_v26 }
  0xd3   : > { %711 = vmatmul.f32.vlgmr.msrb.gmra.mxu1 %v1907_v53 }
  0xd4   : > { %760 = vmatmul.f32.gmra.mxu2 %v481_v14 }
  0xd6   : > { %821 = vmatmul.f32.gmra.mxu3 %v1934_v26 }
  0xd9   : > { %682 = vmatmul.f32.gmra.mxu0 %v1984_v61 }
  0xdb   : > { %715 = vmatmul.f32.gmra.mxu1 %v1934_v26 }
  0xdc   : > { %768 = vmatmul.f32.gmra.mxu2 %v489_v6 }
  0xde   : > { %825 = vmatmul.f32.gmra.mxu3 %v1984_v61 }
  0xe1   : > { %686 = vmatmul.f32.gmra.mxu0 %v2007_v20 }
  0xe3   : > { %719 = vmatmul.f32.gmra.mxu1 %v1984_v61 }
  0xe4   : > { %776 = vmatmul.f32.gmra.mxu2 %v497_v15 }
  0xe6   : > { %829 = vmatmul.f32.gmra.mxu3 %v2007_v20 }
  0xe9   : > { %859 = vmatmul.f32.vlgmr.msra.gmra.mxu0 %v1910_v4 }
  0xeb   : > { %723 = vmatmul.f32.gmra.mxu1 %v2007_v20 }
  0xec   : > { %952 = vmatmul.f32.vlgmr.msra.gmra.mxu2 %v1907_v53 }
  0xee   : > { %989 = vmatmul.f32.vlgmr.msra.gmra.mxu3 %v1907_v53 }
  0xf1   : > { %864 = vmatmul.f32.gmra.mxu0 %v1954_v41 }
  0xf3   : > { %901 = vmatmul.f32.vlgmr.msra.gmra.mxu1 %v1931_v19 }
  0xf4   : > { %956 = vmatmul.f32.gmra.mxu2 %v1934_v26 }
  0xf6   : > { %993 = vmatmul.f32.gmra.mxu3 %v1934_v26 }
  0xf9   : > { %869 = vmatmul.f32.gmra.mxu0 %v1999_v9 }
  0xfb   : > { %907 = vmatmul.f32.gmra.mxu1 %v1977_v55 }
  0xfc   : > { %960 = vmatmul.f32.gmra.mxu2 %v1984_v61 }
  0xfe   : > { %997 = vmatmul.f32.gmra.mxu3 %v1984_v61 }
 0x101   : > { %874 = vmatmul.f32.gmra.mxu0 %v494_v22 }
 0x103   : > { %913 = vmatmul.f32.gmra.mxu1 %v2005_v18 }
 0x104   : > { %964 = vmatmul.f32.gmra.mxu2 %v2007_v20 }
 0x106   : > { %1001 = vmatmul.f32.gmra.mxu3 %v2007_v20 }
 0x10b   : > { %919 = vmatmul.f32.gmra.mxu1 %v495_v23  ;;  %v2102_v23 = vsub.f32 %v1034_v5, %v2096_v17 }
 0x123   : > { %v475_v53 = vpop.f32.mrf.mxu0 }
 0x124   : > { %v476_v46 = vadd.f32 %v475_v53, %v2080_v45 }
 0x12b   : > { %v582_v7 = vpop.f32.mrf.mxu2 }
 0x12c   : > { %v624_v19 = vpop.f32.mrf.mxu3 }
 0x12d   : > { %v483_v4 = vpop.f32.mrf.mxu0  ;;  %v540_v16 = vpop.f32.mrf.mxu1 }
 0x12e   : > { %v484_v43 = vadd.f32 %v483_v4, %v2076_v42  ;;  %v541_v49 = vadd.f32 %v540_v16, %v476_v46  ;;  %v1037_v16 = vsel %vm436_vm0, %v299_v21, 0 }
 0x130   : > { %v583_v57 = vadd.f32 %v582_v7, %v541_v49 }
 0x132   : > { %v625_v63 = vadd.f32 %v624_v19, %v583_v57 }
 0x136   : > { %v491_v24 = vpop.f32.mrf.mxu0 }
 0x137   : > { %v587_v25 = vpop.f32.mrf.mxu2  ;;  %v492_v44 = vadd.f32 %v491_v24, %v2070_v37 }
 0x138   : > { %v544_v26 = vpop.f32.mrf.mxu1 }
 0x139   : > { %v630_v27 = vpop.f32.mrf.mxu3  ;;  %v545_v47 = vadd.f32 %v544_v26, %v484_v43 }
 0x13b   : > { %v588_v54 = vadd.f32 %v587_v25, %v545_v47 }
 0x13d   : > { %v631_v60 = vadd.f32 %v630_v27, %v588_v54  ;;  %v2116_v27 = vand.u32 4294901760, %v2102_v23 }
 0x13e   : > { %v499_v28 = vpop.f32.mrf.mxu0 }
 0x13f   : > { %v592_v29 = vpop.f32.mrf.mxu2  ;;  %v500_v58 = vadd.f32 %v499_v28, %v2068_v34  ;;  %v2118_v28 = vand.u32 4294901760, %v1037_v16 }
 0x140   : > { %v548_v30 = vpop.f32.mrf.mxu1 }
 0x141   : > { %v636_v31 = vpop.f32.mrf.mxu3  ;;  %v549_v48 = vadd.f32 %v548_v30, %v492_v44 }
 0x143   : > { %v593_v55 = vadd.f32 %v592_v29, %v549_v48 }
 0x145   : > { %v637_v61 = vadd.f32 %v636_v31, %v593_v55 }
 0x146   : > { %v675_v33 = vpop.f32.mrf.mxu0 }
 0x147   : > { %v597_v32 = vpop.f32.mrf.mxu2  ;;  %v676_v10 = vadd.f32 %v675_v33, %v625_v63 }
 0x148   : > { %v552_v35 = vpop.f32.mrf.mxu1 }
 0x149   : > { %v642_v36 = vpop.f32.mrf.mxu3  ;;  %v553_v62 = vadd.f32 %v552_v35, %v500_v58 }
 0x14b   : > { %v598_v9 = vadd.f32 %v597_v32, %v553_v62  ;;  %v300_v32 = vld [vmem:[%s2337_s5 + $0x10] sm:$0xff]  ;;  %v301_v62 = vld [vmem:[%s2337_s5 + $0x18] sm:$0xff] }
 0x14c   : > { %v1040_v47 = vsel %vm436_vm0, %v300_v32, 0 }
 0x14d   : > { %v643_v22 = vadd.f32 %v642_v36, %v598_v9  ;;  %v1068_v36 = vsub.f32 %v2102_v23, %v2116_v27  ;;  %v2152_v58 = vand.u32 4294901760, %v1040_v47 }
 0x14e   : > { %v679_v38 = vpop.f32.mrf.mxu0 }
 0x14f   : > { %v2072_v39 = vpop.f32.mrf.mxu2  ;;  %v680_v0 = vadd.f32 %v679_v38, %v631_v60  ;;  %v2132_v38 = vsub.f32 %v1037_v16, %v2118_v28  ;;  %v2147_v55 = vand.u32 4294901760, %v1068_v36  ;;  %v2168_v5 = vsub.f32 %v1040_v47, %v2152_v58 }
 0x150   : > { %v712_v40 = vpop.f32.mrf.mxu1 }
 0x151   : > { %v2074_v41 = vpop.f32.mrf.mxu3  ;;  %v713_v18 = vadd.f32 %v712_v40, %v676_v10  ;;  %v2150_v57 = vand.u32 4294901760, %v2132_v38  ;;  %v1043_v10 = vsel %vm436_vm0, %v301_v62, 0 }
 0x153   : > { %v1005_v11 = vmax.f32 %v713_v18, 0.0 }
 0x155   : > { %v2120_v29 = vand.u32 4294901760, %v1005_v11 }
 0x156   : > { %v683_v50 = vpop.f32.mrf.mxu0 }
 0x157   : > { %v2083_v51 = vpop.f32.mrf.mxu2  ;;  %v684_v1 = vadd.f32 %v683_v50, %v637_v61  ;;  %v2135_v40 = vsub.f32 %v1005_v11, %v2120_v29 }
 0x158   : > { %v716_v52 = vpop.f32.mrf.mxu1  ;;  %v762_v63 = vadd.f32 %v2083_v51, %v2076_v42 }
 0x159   : > { %v2085_v56 = vpop.f32.mrf.mxu3  ;;  %v717_v12 = vadd.f32 %v716_v52, %v680_v0  ;;  %v1130_v61 = vand.u32 4294901760, %v2135_v40 }
 0x15b   : > { %v1007_v6 = vmax.f32 %v717_v12, 0.0  ;;  %v1131_v9 = vsub.f32 %v2135_v40, %v1130_v61 }
 0x15d   : > { %v2111_v24 = vand.u32 4294901760, %v1007_v6 }
 0x15e   : > { %v687_v2 = vpop.f32.mrf.mxu0 }
 0x15f   : > { %v2091_v3 = vpop.f32.mrf.mxu2  ;;  %v688_v15 = vadd.f32 %v687_v2, %v643_v22  ;;  %v1123_v33 = vsub.f32 %v1007_v6, %v2111_v24  ;;  %v1076_v2 = vsub.f32 %v2132_v38, %v2150_v57  ;;  %v2183_v22 = vand.u32 4294901760, %v2168_v5 }
 0x160   : > { %v720_v8 = vpop.f32.mrf.mxu1  ;;  %v770_v18 = vadd.f32 %v2091_v3, %v2070_v37  ;;  %v2185_v6 = vand.u32 4294901760, %v1043_v10  ;;  %v1132_v37 = vand.u32 4294901760, %v1131_v9 }
 0x161   : > { %v721_v13 = vadd.f32 %v720_v8, %v684_v1  ;;  %v2094_v14 = vpop.f32.mrf.mxu3  ;;  %v1124_v54 = vand.u32 4294901760, %v1123_v33  ;;  %v754_v8 = vadd.f32 %v2072_v39, %v2080_v45  ;;  %v2180_v21 = vand.u32 4294901760, %v1076_v2 }
 0x162   : > { %v827_v3 = vadd.f32 %v2094_v14, %v770_v18 }
 0x163   : > { %v1009_v20 = vmax.f32 %v721_v13, 0.0  ;;  %v1125_v1 = vsub.f32 %v1123_v33, %v1124_v54  ;;  %v823_v13 = vadd.f32 %v2085_v56, %v762_v63  ;;  %v819_v11 = vadd.f32 %v2074_v41, %v754_v8 }
 0x164   : > { %v2195_v41 = vsub.f32 %v1043_v10, %v2185_v6 }
 0x165   : > { %v2104_v53 = vand.u32 4294901760, %v1009_v20  ;;  %v1126_v39 = vand.u32 4294901760, %v1125_v1 }
 0x166   : > { %v2108_v7 = vpop.f32.mrf.mxu0 }
 0x167   : > { %v2106_v4 = vpop.f32.mrf.mxu2  ;;  %v1117_v30 = vsub.f32 %v1009_v20, %v2104_v53 }
 0x168   : > { %v724_v19 = vpop.f32.mrf.mxu1 }
 0x169   : > { %v725_v25 = vadd.f32 %v724_v19, %v688_v15  ;;  %v2113_v26 = vpop.f32.mrf.mxu3  ;;  %v1118_v46 = vand.u32 4294901760, %v1117_v30  ;;  %v861_v15 = vadd.f32 %v2108_v7, %v819_v11  ;;  %v1084_v19 = vsub.f32 %v2168_v5, %v2183_v22 }
 0x16a   : > { %v778_v7 = vadd.f32 %v2106_v4, %v2068_v34 }
 0x16b   : > { %v1011_v31 = vmax.f32 %v725_v25, 0.0  ;;  %v1119_v60 = vsub.f32 %v1117_v30, %v1118_v46 }
 0x16c   : > { %v831_v34 = vadd.f32 %v2113_v26, %v778_v7 }
 0x16d   : > { %v2127_v35 = vand.u32 4294901760, %v1011_v31  ;;  %v1120_v42 = vand.u32 4294901760, %v1119_v60 }
 0x16e   : > { %v865_v48 = vpop.f32.mrf.mxu0 }
 0x16f   : > { %v1111_v43 = vsub.f32 %v1011_v31, %v2127_v35  ;;  %1058 = vmatpush.msrb.mxu0 %v2127_v35  ;;  %1209 = vmatpush.msrb.mxu3 %v2127_v35  ;;  %v2140_v44 = vpop.f32.mrf.mxu2  ;;  %v866_v56 = vadd.f32 %v865_v48, %v823_v13 }
 0x170   : > { %v902_v49 = vpop.f32.mrf.mxu1 }
 0x171   : > { %v1112_v50 = vand.u32 4294901760, %v1111_v43  ;;  %1060 = vmatpush.msrb.mxu0 %v2104_v53  ;;  %1165 = vmatpush.msrb.mxu2 %v1111_v43  ;;  %v2144_v52 = vpop.f32.mrf.mxu3  ;;  %v903_v25 = vadd.f32 %v902_v49, %v861_v15 }
 0x172   : > { %1211 = vmatpush.msrb.mxu3 %v2104_v53 }
 0x173   : > { %v1113_v59 = vsub.f32 %v1111_v43, %v1112_v50  ;;  %1062 = vmatpush.msrb.mxu0 %v2111_v24  ;;  %1168 = vmatpush.msrb.mxu2 %v1117_v30  ;;  %v2206_v43 = vand.u32 4294901760, %v2195_v41 }
 0x174   : > { %1213 = vmatpush.msrb.mxu3 %v2111_v24 }
 0x175   : > { %1064 = vmatpush.msrb.mxu0 %v2120_v29  ;;  %1171 = vmatpush.msrb.mxu2 %v1123_v33  ;;  %v1114_v0 = vand.u32 4294901760, %v1113_v59 }
 0x176   : > { %1215 = vmatpush.msrb.mxu3 %v2120_v29  ;;  %1070 = vmatmul.f32.vlgmr.msrb.gmra.mxu0 %v2147_v55  ;;  %v870_v20 = vpop.f32.mrf.mxu0 }
 0x177   : > { %1256 = vmatpush.msra.mxu0 %v1112_v50  ;;  %1115 = vmatpush.msrb.mxu1 %v1114_v0  ;;  %v957_v51 = vpop.f32.mrf.mxu2  ;;  %v871_v30 = vadd.f32 %v870_v20, %v827_v3 }
 0x178   : > { %1174 = vmatpush.msrb.mxu2 %v2135_v40  ;;  %v908_v12 = vpop.f32.mrf.mxu1  ;;  %1219 = vmatmul.f32.vlgmr.msrb.gmra.mxu3 %v2116_v27  ;;  %v2203_v40 = vand.u32 4294901760, %v1084_v19 }
 0x179   : > { %1260 = vmatpush.msra.mxu0 %v1118_v46  ;;  %1121 = vmatpush.msrb.mxu1 %v1120_v42  ;;  %v994_v45 = vpop.f32.mrf.mxu3  ;;  %v909_v16 = vadd.f32 %v908_v12, %v866_v56 }
 0x17a   : > { %1177 = vmatmul.f32.vlgmr.msrb.gmra.mxu2 %v2102_v23 }
 0x17b   : > { %1264 = vmatpush.msra.mxu0 %v1124_v54  ;;  %1127 = vmatpush.msrb.mxu1 %v1126_v39  ;;  %v958_v32 = vadd.f32 %v957_v51, %v909_v16 }
 0x17d   : > { %1268 = vmatpush.msra.mxu0 %v1130_v61  ;;  %1133 = vmatpush.msrb.mxu1 %v1132_v37  ;;  %v995_v4 = vadd.f32 %v994_v45, %v958_v32 }
 0x17e   : > { %1078 = vmatmul.f32.gmra.mxu0 %v2180_v21  ;;  %1135 = vmatmul.f32.vlgmr.msrb.gmra.mxu1 %v2096_v17  ;;  %v875_v47 = vpop.f32.mrf.mxu0 }
 0x17f   : > { %1299 = vmatpush.msra.mxu1 %v2127_v35  ;;  %v961_v14 = vpop.f32.mrf.mxu2  ;;  %v954_v35 = vadd.f32 %v2140_v44, %v903_v25  ;;  %v876_v44 = vadd.f32 %v875_v47, %v831_v34  ;;  %v1008_v26 = vmax.f32 %v995_v4, 0.0  ;;  %v1016_v25 = vpop.permute.xlu0 %1015 }
 0x180   : > { %v914_v31 = vpop.f32.mrf.mxu1  ;;  %1225 = vmatmul.f32.gmra.mxu3 %v2150_v57 }
 0x181   : > { %v915_v33 = vadd.f32 %v914_v31, %v871_v30  ;;  %1301 = vmatpush.msra.mxu1 %v2104_v53  ;;  %v998_v36 = vpop.f32.mrf.mxu3  ;;  %v1092_v53 = vsub.f32 %v2195_v41, %v2206_v43  ;;  %v991_v49 = vadd.f32 %v2144_v52, %v954_v35  ;;  %v1339_v0 = vand.u32 4294901760, %v1008_v26 }
 0x182   : > { %1182 = vmatmul.f32.gmra.mxu2 %v2132_v38 }
 0x183   : > { %v962_v46 = vadd.f32 %v961_v14, %v915_v33  ;;  %1303 = vmatpush.msra.mxu1 %v2111_v24  ;;  %v2219_v60 = vand.u32 4294901760, %v1092_v53  ;;  %v1006_v61 = vmax.f32 %v991_v49, 0.0  ;;  %v1401_v42 = vsub.f32 %v1008_v26, %v1339_v0  ;;  %v1021_v33 = vpop.permute.xlu1 %1020  ;;  %v1026_v53 = vpop.permute.xlu2 %1025 }
 0x185   : > { %v999_v48 = vadd.f32 %v998_v36, %v962_v46  ;;  %1305 = vmatpush.msra.mxu1 %v2120_v29  ;;  %v1341_v52 = vand.u32 4294901760, %v1006_v61  ;;  %v1402_v18 = vand.u32 4294901760, %v1401_v42 }
 0x186   : > { %1086 = vmatmul.f32.gmra.mxu0 %v2203_v40  ;;  %1139 = vmatmul.f32.gmra.mxu1 %v2118_v28 }
 0x187   : > { %v1010_v50 = vmax.f32 %v999_v48, 0.0  ;;  %v965_v24 = vpop.f32.mrf.mxu2  ;;  %v1407_v9 = vsub.f32 %v1006_v61, %v1341_v52  ;;  %v1403_v56 = vsub.f32 %v1401_v42, %v1402_v18 }
 0x188   : > { %v920_v54 = vpop.f32.mrf.mxu1  ;;  %1231 = vmatmul.f32.gmra.mxu3 %v2183_v22 }
 0x189   : > { %v921_v59 = vadd.f32 %v920_v54, %v876_v44  ;;  %v1002_v29 = vpop.f32.mrf.mxu3  ;;  %v1337_v62 = vand.u32 4294901760, %v1010_v50  ;;  %v1408_v20 = vand.u32 4294901760, %v1407_v9  ;;  %v1404_v15 = vand.u32 4294901760, %v1403_v56 }
 0x18a   : > { %1187 = vmatmul.f32.gmra.mxu2 %v2168_v5 }
 0x18b   : > { %v966_v63 = vadd.f32 %v965_v24, %v921_v59  ;;  %v1395_v2 = vsub.f32 %v1010_v50, %v1337_v62  ;;  %v1409_v3 = vsub.f32 %v1407_v9, %v1408_v20 }
 0x18d   : > { %v1003_v1 = vadd.f32 %v1002_v29, %v966_v63  ;;  %v1396_v12 = vand.u32 4294901760, %v1395_v2  ;;  %v1410_v16 = vand.u32 4294901760, %v1409_v3  ;;  %v1031_v63 = vpop.permute.xlu0 %1030 }
 0x18e   : > { %1094 = vmatmul.f32.gmra.mxu0 %v2219_v60  ;;  %1143 = vmatmul.f32.gmra.mxu1 %v2152_v58 }
 0x18f   : > { %v1012_v8 = vmax.f32 %v1003_v1, 0.0  ;;  %v1397_v45 = vsub.f32 %v1395_v2, %v1396_v12 }
 0x190   : > { %1237 = vmatmul.f32.gmra.mxu3 %v2206_v43 }
 0x191   : > { %v1335_v51 = vand.u32 4294901760, %v1012_v8  ;;  %v1398_v37 = vand.u32 4294901760, %v1397_v45 }
 0x192   : > { %1192 = vmatmul.f32.gmra.mxu2 %v2195_v41 }
 0x193   : > { %v1389_v10 = vsub.f32 %v1012_v8, %v1335_v51  ;;  %1336 = vmatpush.msra.mxu2 %v1335_v51  ;;  %1487 = vmatpush.msrb.mxu1 %v1335_v51 }
 0x195   : > { %v1390_v13 = vand.u32 4294901760, %v1389_v10  ;;  %1338 = vmatpush.msra.mxu2 %v1337_v62  ;;  %1443 = vmatpush.msrb.mxu0 %v1389_v10 }
 0x196   : > { %1489 = vmatpush.msrb.mxu1 %v1337_v62  ;;  %1270 = vmatmul.f32.vlgmr.msra.gmra.mxu0 %v2096_v17 }
 0x197   : > { %v1391_v39 = vsub.f32 %v1389_v10, %v1390_v13  ;;  %1147 = vmatmul.f32.gmra.mxu1 %v2185_v6  ;;  %1340 = vmatpush.msra.mxu2 %v1339_v0 }
 0x198   : > { %1446 = vmatpush.msrb.mxu0 %v1395_v2  ;;  %1491 = vmatpush.msrb.mxu1 %v1339_v0 }
 0x199   : > { %1342 = vmatpush.msra.mxu2 %v1341_v52  ;;  %v1392_v11 = vand.u32 4294901760, %v1391_v39 }
 0x19a   : > { %1449 = vmatpush.msrb.mxu0 %v1401_v42  ;;  %1493 = vmatpush.msrb.mxu1 %v1341_v52 }
 0x19b   : > { %1348 = vmatmul.f32.vlgmr.msra.gmra.mxu2 %v2147_v55  ;;  %1393 = vmatpush.msra.mxu3 %v1392_v11 }
 0x19c   : > { %1534 = vmatpush.msrb.mxu2 %v1390_v13  ;;  %1452 = vmatpush.msrb.mxu0 %v1407_v9 }
 0x19d   : > { %1399 = vmatpush.msra.mxu3 %v1398_v37 }
 0x19e   : > { %1538 = vmatpush.msrb.mxu2 %v1396_v12  ;;  %1274 = vmatmul.f32.gmra.mxu0 %v2118_v28 }
 0x19f   : > { %1307 = vmatmul.f32.vlgmr.msra.gmra.mxu1 %v2096_v17  ;;  %1405 = vmatpush.msra.mxu3 %v1404_v15 }
 0x1a0   : > { %1542 = vmatpush.msrb.mxu2 %v1402_v18 }
 0x1a1   : > { %1411 = vmatpush.msra.mxu3 %v1410_v16 }
 0x1a2   : > { %1546 = vmatpush.msrb.mxu2 %v1408_v20  ;;  %1413 = vmatmul.f32.vlgmr.msra.gmra.mxu3 %v2096_v17 }
 0x1a3   : > { %1356 = vmatmul.f32.gmra.mxu2 %v2180_v21  ;;  %1577 = vmatpush.msrb.mxu3 %v1335_v51 }
 0x1a5   : > { %1579 = vmatpush.msrb.mxu3 %v1337_v62 }
 0x1a6   : > { %1278 = vmatmul.f32.gmra.mxu0 %v2152_v58 }
 0x1a7   : > { %1311 = vmatmul.f32.gmra.mxu1 %v2118_v28  ;;  %1581 = vmatpush.msrb.mxu3 %v1339_v0 }
 0x1a9   : > { %1583 = vmatpush.msrb.mxu3 %v1341_v52 }
 0x1aa   : > { %1417 = vmatmul.f32.gmra.mxu3 %v2118_v28 }
 0x1ab   : > { %1364 = vmatmul.f32.gmra.mxu2 %v2203_v40 }
 0x1ae   : > { %1282 = vmatmul.f32.gmra.mxu0 %v2185_v6 }
 0x1af   : > { %1315 = vmatmul.f32.gmra.mxu1 %v2152_v58 }
 0x1b2   : > { %1421 = vmatmul.f32.gmra.mxu3 %v2152_v58 }
 0x1b3   : > { %1372 = vmatmul.f32.gmra.mxu2 %v2219_v60 }
 0x1b6   : > { %1455 = vmatmul.f32.vlgmr.msrb.gmra.mxu0 %v2102_v23 }
 0x1b7   : > { %1319 = vmatmul.f32.gmra.mxu1 %v2185_v6 }
 0x1ba   : > { %1425 = vmatmul.f32.gmra.mxu3 %v2185_v6 }
 0x1bb   : > { %1548 = vmatmul.f32.vlgmr.msrb.gmra.mxu2 %v2096_v17 }
 0x1be   : > { %1460 = vmatmul.f32.gmra.mxu0 %v2132_v38 }
 0x1bf   : > { %1497 = vmatmul.f32.vlgmr.msrb.gmra.mxu1 %v2116_v27 }
 0x1c2   : > { %1585 = vmatmul.f32.vlgmr.msrb.gmra.mxu3 %v2096_v17 }
 0x1c3   : > { %1552 = vmatmul.f32.gmra.mxu2 %v2118_v28 }
 0x1c6   : > { %1465 = vmatmul.f32.gmra.mxu0 %v2168_v5 }
 0x1c7   : > { %1503 = vmatmul.f32.gmra.mxu1 %v2150_v57 }
 0x1ca   : > { %1589 = vmatmul.f32.gmra.mxu3 %v2118_v28 }
 0x1cb   : > { %1556 = vmatmul.f32.gmra.mxu2 %v2152_v58 }
 0x1ce   : > { %1470 = vmatmul.f32.gmra.mxu0 %v2195_v41 }
 0x1cf   : > { %1509 = vmatmul.f32.gmra.mxu1 %v2183_v22 }
 0x1d2   : > { %1593 = vmatmul.f32.gmra.mxu3 %v2152_v58 }
 0x1d3   : > { %1560 = vmatmul.f32.gmra.mxu2 %v2185_v6 }
 0x1d7   : > { %1515 = vmatmul.f32.gmra.mxu1 %v2206_v43 }
 0x1da   : > { %1597 = vmatmul.f32.gmra.mxu3 %v2185_v6 }
 0x1f3   : > { %v1071_v17 = vpop.f32.mrf.mxu0 }
 0x1f4   : > { %v1072_v58 = vadd.f32 %v1071_v17, %v1016_v25 }
 0x1fb   : > { %v1079_v23 = vpop.f32.mrf.mxu0  ;;  %v1136_v27 = vpop.f32.mrf.mxu1 }
 0x1fc   : > { %v1220_v55 = vpop.f32.mrf.mxu3  ;;  %v1137_v30 = vadd.f32 %v1136_v27, %v1072_v58  ;;  %v1080_v36 = vadd.f32 %v1079_v23, %v1021_v33 }
 0x1fd   : > { %v1178_v38 = vpop.f32.mrf.mxu2 }
 0x1fe   : > { %v1179_v32 = vadd.f32 %v1178_v38, %v1137_v30 }
 0x200   : > { %v1221_v40 = vadd.f32 %v1220_v55, %v1179_v32 }
 0x203   : > { %v1087_v28 = vpop.f32.mrf.mxu0  ;;  %v1140_v57 = vpop.f32.mrf.mxu1 }
 0x204   : > { %v1226_v21 = vpop.f32.mrf.mxu3  ;;  %v1141_v43 = vadd.f32 %v1140_v57, %v1080_v36  ;;  %v1088_v44 = vadd.f32 %v1087_v28, %v1026_v53 }
 0x205   : > { %v1183_v5 = vpop.f32.mrf.mxu2 }
 0x206   : > { %v1184_v34 = vadd.f32 %v1183_v5, %v1141_v43 }
 0x208   : > { %v1227_v54 = vadd.f32 %v1226_v21, %v1184_v34 }
 0x20b   : > { %v1095_v19 = vpop.f32.mrf.mxu0  ;;  %v1144_v41 = vpop.f32.mrf.mxu1 }
 0x20c   : > { %v1232_v14 = vpop.f32.mrf.mxu3  ;;  %v1145_v24 = vadd.f32 %v1144_v41, %v1088_v44  ;;  %v1096_v1 = vadd.f32 %v1095_v19, %v1031_v63 }
 0x20d   : > { %v1188_v22 = vpop.f32.mrf.mxu2 }
 0x20e   : > { %v1189_v60 = vadd.f32 %v1188_v22, %v1145_v24 }
 0x210   : > { %v1233_v2 = vadd.f32 %v1232_v14, %v1189_v60 }
 0x213   : > { %v1271_v31 = vpop.f32.mrf.mxu0 }
 0x214   : > { %v1148_v7 = vpop.f32.mrf.mxu1  ;;  %v1272_v35 = vadd.f32 %v1271_v31, %v1221_v40  ;;  %v1238_v4 = vpop.f32.mrf.mxu3 }
 0x215   : > { %v1193_v6 = vpop.f32.mrf.mxu2  ;;  %v1149_v8 = vadd.f32 %v1148_v7, %v1096_v1 }
 0x217   : > { %v1194_v10 = vadd.f32 %v1193_v6, %v1149_v8 }
 0x219   : > { %v1239_v45 = vadd.f32 %v1238_v4, %v1194_v10 }
 0x21b   : > { %v1275_v46 = vpop.f32.mrf.mxu0 }
 0x21c   : > { %v1308_v47 = vpop.f32.mrf.mxu1  ;;  %v1276_v26 = vadd.f32 %v1275_v46, %v1227_v54 }
 0x21d   : > { %v1309_v48 = vadd.f32 %v1308_v47, %v1272_v35 }
 0x21e   : > { %v1349_v49 = vpop.f32.mrf.mxu2 }
 0x21f   : > { %v1601_v50 = vmax.f32 %v1309_v48, 0.0  ;;  %v1350_v17 = vadd.f32 %v1349_v49, %v1016_v25 }
 0x221   : > { %1609 = vxpose.xlu1.b32.start [1/4] (short) %v1601_v50, 128 }
 0x223   : > { %v1279_v59 = vpop.f32.mrf.mxu0 }
 0x224   : > { %v1312_v29 = vpop.f32.mrf.mxu1  ;;  %v1280_v42 = vadd.f32 %v1279_v59, %v1233_v2 }
 0x225   : > { %v1313_v61 = vadd.f32 %v1312_v29, %v1276_v26  ;;  %v1414_v62 = vpop.f32.mrf.mxu3 }
 0x226   : > { %v1357_v0 = vpop.f32.mrf.mxu2  ;;  %v1415_v23 = vadd.f32 %v1414_v62, %v1350_v17 }
 0x227   : > { %v1603_v52 = vmax.f32 %v1313_v61, 0.0  ;;  %v1358_v21 = vadd.f32 %v1357_v0, %v1021_v33 }
 0x229   : > { %1610 = vxpose.xlu1.b32.cont [2/4] (short) %v1603_v52, 128 }
 0x22b   : > { %v1283_v51 = vpop.f32.mrf.mxu0 }
 0x22c   : > { %v1316_v9 = vpop.f32.mrf.mxu1  ;;  %v1284_v20 = vadd.f32 %v1283_v51, %v1239_v45 }
 0x22d   : > { %v1317_v12 = vadd.f32 %v1316_v9, %v1280_v42  ;;  %v1418_v13 = vpop.f32.mrf.mxu3 }
 0x22e   : > { %v1365_v18 = vpop.f32.mrf.mxu2  ;;  %v1419_v19 = vadd.f32 %v1418_v13, %v1358_v21 }
 0x22f   : > { %v1605_v39 = vmax.f32 %v1317_v12, 0.0  ;;  %v1366_v36 = vadd.f32 %v1365_v18, %v1026_v53 }
 0x231   : > { %1611 = vxpose.xlu1.b32.cont [3/4] (short) %v1605_v39, 128 }
 0x233   : > { %v1456_v37 = vpop.f32.mrf.mxu0 }
 0x234   : > { %v1320_v11 = vpop.f32.mrf.mxu1  ;;  %v1457_v55 = vadd.f32 %v1456_v37, %v1415_v23 }
 0x235   : > { %v1321_v56 = vadd.f32 %v1320_v11, %v1284_v20  ;;  %v1422_v3 = vpop.f32.mrf.mxu3 }
 0x236   : > { %v1373_v15 = vpop.f32.mrf.mxu2  ;;  %v1423_v25 = vadd.f32 %v1422_v3, %v1366_v36 }
 0x237   : > { %v1607_v16 = vmax.f32 %v1321_v56, 0.0  ;;  %v1374_v48 = vadd.f32 %v1373_v15, %v1031_v63 }
 0x239   : > { %1612 = vxpose.xlu1.b32.end [4/4] (short) %v1607_v16, 128 }
 0x23b   : > { %v1461_v57 = vpop.f32.mrf.mxu0 }
 0x23c   : > { %v1498_v27 = vpop.f32.mrf.mxu1  ;;  %v1462_v30 = vadd.f32 %v1461_v57, %v1419_v19 }
 0x23d   : > { %v1426_v38 = vpop.f32.mrf.mxu3  ;;  %v1499_v5 = vadd.f32 %v1498_v27, %v1457_v55 }
 0x23e   : > { %v1549_v28 = vpop.f32.mrf.mxu2  ;;  %v1427_v44 = vadd.f32 %v1426_v38, %v1374_v48 }
 0x23f   : > { %v1550_v41 = vadd.f32 %v1549_v28, %v1499_v5 }
 0x243   : > { %v1466_v6 = vpop.f32.mrf.mxu0 }
 0x244   : > { %v1504_v22 = vpop.f32.mrf.mxu1  ;;  %v1467_v46 = vadd.f32 %v1466_v6, %v1423_v25 }
 0x245   : > { %v1586_v58 = vpop.f32.mrf.mxu3  ;;  %v1505_v7 = vadd.f32 %v1504_v22, %v1462_v30 }
 0x246   : > { %v1553_v14 = vpop.f32.mrf.mxu2  ;;  %v1587_v31 = vadd.f32 %v1586_v58, %v1550_v41 }
 0x247   : > { %v1554_v40 = vadd.f32 %v1553_v14, %v1505_v7 }
 0x248   : > { %v1602_v32 = vmax.f32 %v1587_v31, 0.0 }
 0x24a   : > { %1641 = vxpose.xlu2.b32.start [1/4] (short) %v1602_v32, 128 }
 0x24b   : > { %v1471_v49 = vpop.f32.mrf.mxu0 }
 0x24c   : > { %v1510_v43 = vpop.f32.mrf.mxu1  ;;  %v1472_v26 = vadd.f32 %v1471_v49, %v1427_v44 }
 0x24d   : > { %v1590_v35 = vpop.f32.mrf.mxu3  ;;  %v1511_v33 = vadd.f32 %v1510_v43, %v1467_v46 }
 0x24e   : > { %v1591_v47 = vadd.f32 %v1590_v35, %v1554_v40  ;;  %v1557_v34 = vpop.f32.mrf.mxu2 }
 0x24f   : > { %v1558_v50 = vadd.f32 %v1557_v34, %v1511_v33 }
 0x250   : > { %v1604_v4 = vmax.f32 %v1591_v47, 0.0 }
 0x252   : > { %1642 = vxpose.xlu2.b32.cont [2/4] (short) %v1604_v4, 128 }
 0x254   : > { %v1516_v54 = vpop.f32.mrf.mxu1 }
 0x255   : > { %v1594_v24 = vpop.f32.mrf.mxu3  ;;  %v1517_v59 = vadd.f32 %v1516_v54, %v1472_v26 }
 0x256   : > { %v1595_v53 = vadd.f32 %v1594_v24, %v1558_v50  ;;  %v1561_v60 = vpop.f32.mrf.mxu2 }
 0x257   : > { %v1562_v61 = vadd.f32 %v1561_v60, %v1517_v59 }
 0x258   : > { %v1606_v29 = vmax.f32 %v1595_v53, 0.0 }
 0x25a   : > { %1643 = vxpose.xlu2.b32.cont [3/4] (short) %v1606_v29, 128 }
 0x25d   : > { %v1598_v62 = vpop.f32.mrf.mxu3 }
 0x25e   : > { %v1599_v0 = vadd.f32 %v1598_v62, %v1562_v61 }
 0x260   : > { %v1608_v1 = vmax.f32 %v1599_v0, 0.0 }
 0x262   : > { %1644 = vxpose.xlu2.b32.end [4/4] (short) %v1608_v1, 128 }
 0x2c5   : > { %v1625_v63 = vpop.trf.xlu1 }
 0x2c6   : > { %1673 = vst.msk [vmem:[%s2263_s18] sm:$0xff] %vm436_vm0, %v1625_v63 }
 0x2cd   : > { %v1626_v52 = vpop.trf.xlu1 }
 0x2ce   : > { %1674 = vst.msk [vmem:[%s2263_s18 + $0x8] sm:$0xff] %vm436_vm0, %v1626_v52 }
 0x2d5   : > { %v1627_v2 = vpop.trf.xlu1 }
 0x2d6   : > { %1675 = vst.msk [vmem:[%s2263_s18 + $0x10] sm:$0xff] %vm436_vm0, %v1627_v2 }
 0x2dd   : > { %v1628_v8 = vpop.trf.xlu1 }
 0x2de   : > { %1676 = vst.msk [vmem:[%s2263_s18 + $0x18] sm:$0xff] %vm436_vm0, %v1628_v8 }
 0x2e3   : > { %v1657_v42 = vpop.trf.xlu2 }
 0x2e4   : > { %1689 = vst.msk [vmem:[%s2263_s18 + $0x80] sm:$0xff] %vm436_vm0, %v1657_v42 }
 0x2e5   : > { %v1629_v51 = vpop.trf.xlu1 }
 0x2e6   : > { %1677 = vst.msk [vmem:[%s2263_s18 + $0x20] sm:$0xff] %vm436_vm0, %v1629_v51 }
 0x2eb   : > { %v1658_v9 = vpop.trf.xlu2 }
 0x2ec   : > { %1690 = vst.msk [vmem:[%s2263_s18 + $0x88] sm:$0xff] %vm436_vm0, %v1658_v9 }
 0x2ed   : > { %v1630_v10 = vpop.trf.xlu1 }
 0x2ee   : > { %1678 = vst.msk [vmem:[%s2263_s18 + $0x28] sm:$0xff] %vm436_vm0, %v1630_v10 }
 0x2f3   : > { %v1659_v12 = vpop.trf.xlu2 }
 0x2f4   : > { %1691 = vst.msk [vmem:[%s2263_s18 + $0x90] sm:$0xff] %vm436_vm0, %v1659_v12 }
 0x2f5   : > { %v1631_v13 = vpop.trf.xlu1 }
 0x2f6   : > { %1679 = vst.msk [vmem:[%s2263_s18 + $0x30] sm:$0xff] %vm436_vm0, %v1631_v13 }
 0x2fb   : > { %v1660_v18 = vpop.trf.xlu2 }
 0x2fc   : > { %1692 = vst.msk [vmem:[%s2263_s18 + $0x98] sm:$0xff] %vm436_vm0, %v1660_v18 }
 0x2fd   : > { %v1632_v39 = vpop.trf.xlu1 }
 0x2fe   : > { %1680 = vst.msk [vmem:[%s2263_s18 + $0x38] sm:$0xff] %vm436_vm0, %v1632_v39 }
 0x303   : > { %v1661_v45 = vpop.trf.xlu2 }
 0x304   : > { %1693 = vst.msk [vmem:[%s2263_s18 + $0xa0] sm:$0xff] %vm436_vm0, %v1661_v45 }
 0x305   : > { %v1633_v20 = vpop.trf.xlu1 }
 0x306   : > { %1681 = vst.msk [vmem:[%s2263_s18 + $0x40] sm:$0xff] %vm436_vm0, %v1633_v20 }
 0x30b   : > { %v1662_v11 = vpop.trf.xlu2 }
 0x30c   : > { %1694 = vst.msk [vmem:[%s2263_s18 + $0xa8] sm:$0xff] %vm436_vm0, %v1662_v11 }
 0x30d   : > { %v1634_v56 = vpop.trf.xlu1 }
 0x30e   : > { %1682 = vst.msk [vmem:[%s2263_s18 + $0x48] sm:$0xff] %vm436_vm0, %v1634_v56 }
 0x313   : > { %v1663_v37 = vpop.trf.xlu2 }
 0x314   : > { %1695 = vst.msk [vmem:[%s2263_s18 + $0xb0] sm:$0xff] %vm436_vm0, %v1663_v37 }
 0x315   : > { %v1635_v3 = vpop.trf.xlu1 }
 0x316   : > { %1683 = vst.msk [vmem:[%s2263_s18 + $0x50] sm:$0xff] %vm436_vm0, %v1635_v3 }
 0x31b   : > { %v1664_v15 = vpop.trf.xlu2 }
 0x31c   : > { %1696 = vst.msk [vmem:[%s2263_s18 + $0xb8] sm:$0xff] %vm436_vm0, %v1664_v15 }
 0x31d   : > { %v1636_v16 = vpop.trf.xlu1 }
 0x31e   : > { %1684 = vst.msk [vmem:[%s2263_s18 + $0x58] sm:$0xff] %vm436_vm0, %v1636_v16 }
 0x323   : > { %v1665_v17 = vpop.trf.xlu2 }
 0x324   : > { %1697 = vst.msk [vmem:[%s2263_s18 + $0xc0] sm:$0xff] %vm436_vm0, %v1665_v17 }
 0x325   : > { %v1637_v23 = vpop.trf.xlu1 }
 0x326   : > { %1685 = vst.msk [vmem:[%s2263_s18 + $0x60] sm:$0xff] %vm436_vm0, %v1637_v23 }
 0x32b   : > { %v1666_v27 = vpop.trf.xlu2 }
 0x32c   : > { %1698 = vst.msk [vmem:[%s2263_s18 + $0xc8] sm:$0xff] %vm436_vm0, %v1666_v27 }
 0x32d   : > { %v1638_v38 = vpop.trf.xlu1 }
 0x32e   : > { %1686 = vst.msk [vmem:[%s2263_s18 + $0x68] sm:$0xff] %vm436_vm0, %v1638_v38 }
 0x333   : > { %v1667_v55 = vpop.trf.xlu2 }
 0x334   : > { %1699 = vst.msk [vmem:[%s2263_s18 + $0xd0] sm:$0xff] %vm436_vm0, %v1667_v55 }
 0x335   : > { %v1639_v28 = vpop.trf.xlu1 }
 0x336   : > { %1687 = vst.msk [vmem:[%s2263_s18 + $0x70] sm:$0xff] %vm436_vm0, %v1639_v28 }
 0x33b   : > { %v1668_v57 = vpop.trf.xlu2 }
 0x33c   : > { %1700 = vst.msk [vmem:[%s2263_s18 + $0xd8] sm:$0xff] %vm436_vm0, %v1668_v57 }
 0x33d   : > { %v1640_v5 = vpop.trf.xlu1 }
 0x33e   : > { %1688 = vst.msk [vmem:[%s2263_s18 + $0x78] sm:$0xff] %vm436_vm0, %v1640_v5 }
 0x343   : > { %v1669_v21 = vpop.trf.xlu2 }
 0x344   : > { %1701 = vst.msk [vmem:[%s2263_s18 + $0xe0] sm:$0xff] %vm436_vm0, %v1669_v21 }
 0x34b   : > { %v1670_v19 = vpop.trf.xlu2 }
 0x34c   : > { %1702 = vst.msk [vmem:[%s2263_s18 + $0xe8] sm:$0xff] %vm436_vm0, %v1670_v19 }
 0x353   : > { %v1671_v41 = vpop.trf.xlu2 }
 0x354   : > { %1703 = vst.msk [vmem:[%s2263_s18 + $0xf0] sm:$0xff] %vm436_vm0, %v1671_v41 }
 0x35b   : > { %v1672_v22 = vpop.trf.xlu2 }
 0x35c   : > { %1704 = vst.msk [vmem:[%s2263_s18 + $0xf8] sm:$0xff] %vm436_vm0, %v1672_v22 }
 0x35d PF: > { %s17_s24 = sadd.s32 1, %s1798_s24  }
 0x35e   : > { %p14_p5 = scmp.ge.s32.totalorder %s17_s24, 4  }
 0x360   :  { %16 = sbr.rel (!%p14_p5) target bundleno = 1 (0x1), region = 78 }

</bundles_post_ra>
